<compile_context>
chip_gen: v7x
topology: tpu7x:2x2x1
jax: 0.10.0
libtpu: 0.0.40
codegen_flags: <defaults>
</compile_context>

<pallas_src>
import functools

import jax
import jax.numpy as jnp
from jax.experimental import pallas as pl
from jax.experimental.pallas import tpu as pltpu


def _round_up(n: int, m: int) -> int:
    return ((n + m - 1) // m) * m


def _fmms_kernel(x_ref, wc_ref, b_ref, wall_ref, o_ref, *,
                 n_emb, m_out, e_chunk, mxu_dtype):
    """One batch tile: o = [x, x^2] @ Wc + b + 0.5 * sum_e (x @ V_e)^2."""
    x = x_ref[...]                                   # (tb, F) f32
    x2 = x * x

    # Linear term fused with the collapsed "-0.5 * (x^2) @ sum_e V_e^2" term:
    # a single MXU matmul with K = 2F instead of two narrow-N matmuls.
    xcat = jnp.concatenate([x, x2], axis=-1)         # (tb, 2F), lane aligned
    base = jnp.dot(xcat, wc_ref[...], preferred_element_type=jnp.float32)
    base = base + b_ref[...]                         # (tb, M)

    # FM term: one big lane-dense matmul over all embeddings (optionally in
    # chunks of e_chunk embeddings to bound the (tb, e_chunk*M) intermediate),
    # then an unrolled lane-aligned group reduction on the (otherwise idle) VPU.
    xb = x.astype(mxu_dtype)
    acc = None
    for c0 in range(0, n_emb, e_chunk):
        ce = min(e_chunk, n_emb - c0)
        w_chunk = wall_ref[:, c0 * m_out:(c0 + ce) * m_out]        # (F, ce*M)
        xv = jnp.dot(xb, w_chunk, preferred_element_type=jnp.float32)
        xv2 = xv * xv
        for e in range(ce):
            s = xv2[:, e * m_out:(e + 1) * m_out]                  # (tb, M)
            acc = s if acc is None else acc + s

    o_ref[...] = (base + 0.5 * acc).astype(o_ref.dtype)


def fmms_forward(x, w_lin, b_lin, weight, *, block_b=None, e_chunk=None,
                 use_bf16=True, vmem_limit_bytes=None, interpret=False):
    """FMMS forward.

    x:      (B, F)    float32
    w_lin:  (F, M)    float32  (nn.Linear weight stored transposed)
    b_lin:  (1, M)    float32
    weight: (E, F, M) float32
    returns (B, M)    float32
    """
    B, F = x.shape
    E, Fw, M = weight.shape
    assert Fw == F and w_lin.shape == (F, M) and b_lin.shape[-1] == M

    f32 = jnp.float32
    mxu_dtype = jnp.bfloat16 if use_bf16 else f32

    # ---- lane-dense padding (multiples of 128 on the lane dims) ------------
    F_pad = _round_up(F, 128)
    M_pad = _round_up(M, 128)

    # ---- batch tile / grid --------------------------------------------------
    tb = block_b if block_b is not None else 256
    tb = max(8, min(_round_up(tb, 8), _round_up(B, 8)))
    if block_b is None and B > 8 and _round_up(B, tb) == tb:
        # A single grid step disables x-tile pipelining and leaves the second
        # TensorCore idle on v7x; split into (at least) two batch tiles.
        tb = max(8, _round_up(pl.cdiv(B, 2), 8))
    B_pad = _round_up(B, tb)
    grid = (B_pad // tb,)

    E_chunk = e_chunk if e_chunk is not None else E
    E_chunk = max(1, min(E_chunk, E))

    # ---- pad inputs & precompute fused weights (tiny one-time XLA ops) ------
    x_p = jnp.zeros((B_pad, F_pad), f32).at[:B, :F].set(x.astype(f32))
    w_lin_p = jnp.zeros((F_pad, M_pad), f32).at[:F, :M].set(w_lin.astype(f32))
    b_p = jnp.zeros((1, M_pad), f32).at[:, :M].set(b_lin.reshape(1, M).astype(f32))
    w_p = jnp.zeros((E, F_pad, M_pad), f32).at[:, :F, :M].set(weight.astype(f32))

    # Wc = [W_lin ; -0.5 * sum_e V_e^2]  (fuses linear and "zp" matmuls, f32).
    w2sum = jnp.sum(w_p * w_p, axis=0)                               # (F_pad, M_pad)
    wc = jnp.concatenate([w_lin_p, -0.5 * w2sum], axis=0)            # (2F_pad, M_pad)
    # W_all: all embeddings side by side -> one lane-dense MXU operand.
    w_all = jnp.transpose(w_p, (1, 0, 2)).reshape(F_pad, E * M_pad)
    w_all = w_all.astype(mxu_dtype)

    # ---- VMEM budget / cost estimate ----------------------------------------
    mxu_bytes = 2 if use_bf16 else 4
    resident = (2 * F_pad * M_pad * 4            # Wc
                + M_pad * 4                      # bias
                + F_pad * E * M_pad * mxu_bytes)  # W_all
    per_tile = tb * F_pad * 4 + tb * M_pad * 4   # x tile + out tile
    inter = (tb * 2 * F_pad * 4                  # [x, x^2]
             + 2 * tb * E_chunk * M_pad * 4      # xv, xv^2 chunk
             + 3 * tb * M_pad * 4)               # base / acc / epilogue
    if vmem_limit_bytes is None:
        # Conservative: assume double-buffering everywhere + headroom, and stay
        # under the smallest physical VMEM across generations (64 MiB on v7x).
        vmem_limit_bytes = 2 * resident + 2 * per_tile + inter + (8 << 20)
        vmem_limit_bytes = max(16 << 20, min(vmem_limit_bytes, 64 << 20))

    flops = (2 * B_pad * (2 * F_pad * M_pad + F_pad * E * M_pad)
             + 4 * B_pad * E * M_pad)
    bytes_accessed = B_pad * F_pad * 4 + resident + B_pad * M_pad * 4
    cost = pl.CostEstimate(flops=int(flops), transcendentals=0,
                           bytes_accessed=int(bytes_accessed))

    # ---- specs ---------------------------------------------------------------
    def _resident_spec(shape, single_buffer):
        idx = lambda i, _shape=shape: (0,) * len(_shape)
        if single_buffer and hasattr(pl, "Buffered"):
            try:
                # Constant index_map -> single buffer (halves resident VMEM).
                return pl.BlockSpec(shape, idx, pipeline_mode=pl.Buffered(1))
            except TypeError:
                pass
        return pl.BlockSpec(shape, idx)

    kernel = functools.partial(_fmms_kernel, n_emb=E, m_out=M_pad,
                               e_chunk=E_chunk, mxu_dtype=mxu_dtype)

    def _build(single_buffer):
        return pl.pallas_call(
            kernel,
            out_shape=jax.ShapeDtypeStruct((B_pad, M_pad), f32),
            grid_spec=pltpu.PrefetchScalarGridSpec(
                num_scalar_prefetch=0,
                grid=grid,
                in_specs=[
                    pl.BlockSpec((tb, F_pad), lambda i: (i, 0)),        # x tile
                    _resident_spec((2 * F_pad, M_pad), single_buffer),  # Wc
                    _resident_spec((1, M_pad), single_buffer),          # bias
                    _resident_spec((F_pad, E * M_pad), single_buffer),  # W_all
                ],
                out_specs=pl.BlockSpec((tb, M_pad), lambda i: (i, 0)),
            ),
            compiler_params=pltpu.CompilerParams(
                dimension_semantics=("parallel",),   # batch tiles independent
                vmem_limit_bytes=int(vmem_limit_bytes),
            ),
            cost_estimate=cost,
            interpret=interpret,
        )

    args = (x_p, wc, b_p, w_all)
    try:
        out = _build(True)(*args)
    except Exception:
        # pl.Buffered(1) not supported by this Pallas build -> plain specs.
        out = _build(False)(*args)

    return out[:B, :M]


def fmms_reference(x, w_lin, b_lin, weight, mxu_dtype=jnp.float32):
    """Pure-JAX reference matching the PyTorch forward; mxu_dtype=bfloat16
    emulates the kernel's bf16 rounding of the dominant (x @ V) matmul."""
    hp = jax.lax.Precision.HIGHEST
    xq = x.astype(mxu_dtype).astype(jnp.float32)
    out = jnp.dot(x, w_lin, precision=hp) + b_lin
    for i in range(weight.shape[0]):
        v = weight[i]
        vq = v.astype(mxu_dtype).astype(jnp.float32)
        xv = jnp.dot(xq, vq, precision=hp)
        zp = jnp.dot(x * x, v * v, precision=hp)
        out = out + (xv * xv - zp) / 2.0
    return out


if __name__ == "__main__":
    # Small, forward-consistent shapes.
    batch = 2
    feature_size = 16
    embedding_size = 4
    model_size = 8
    # hiddensize / layer_size / FM / DNN exist in __init__ but are unused in forward.
    # TODO(synk): deeplayer (dict of nn.Linear) is never invoked in forward; not implemented.

    key = jax.random.PRNGKey(0)
    k_x, k_wlin, k_blin, k_w = jax.random.split(key, 4)

    x = jax.random.normal(k_x, (batch, feature_size), dtype=jnp.float32)
    # nn.Linear(feature_size, model_size): weight (M, F), bias (M); stored transposed (F, M).
    w_lin = jax.random.uniform(
        k_wlin, (feature_size, model_size), dtype=jnp.float32, minval=-0.25, maxval=0.25
    )
    b_lin = jax.random.uniform(
        k_blin, (1, model_size), dtype=jnp.float32, minval=-0.25, maxval=0.25
    )
    # nn.Parameter(torch.rand(E, F, M)) -> uniform [0, 1)
    weight = jax.random.uniform(
        k_w, (embedding_size, feature_size, model_size), dtype=jnp.float32
    )

    # Full-f32 path: exact semantics of the PyTorch module.
    out_f32 = jax.block_until_ready(
        fmms_forward(x, w_lin, b_lin, weight, use_bf16=False))
    ref_f32 = fmms_reference(x, w_lin, b_lin, weight)
    assert out_f32.shape == (batch, model_size)
    assert jnp.allclose(out_f32, ref_f32, rtol=1e-4, atol=1e-4), "f32 mismatch"

    # Default path: bf16 MXU inputs (f32 accumulation) for the dominant FM
    # matmul; compared against a reference with the same bf16 rounding.
    out_bf16 = jax.block_until_ready(fmms_forward(x, w_lin, b_lin, weight))
    ref_bf16 = fmms_reference(x, w_lin, b_lin, weight, mxu_dtype=jnp.bfloat16)
    assert out_bf16.shape == (batch, model_size)
    assert jnp.allclose(out_bf16, ref_bf16, rtol=1e-3, atol=1e-3), "bf16 mismatch"

    print("KERNEL_OK")
</pallas_src>

<mosaic_0001>
module attributes {stable_mosaic.version = 11 : i64} {
  func.func @_fmms_kernel(%arg0: i32, %arg1: memref<8x128xf32, #tpu.memory_space<vmem>>, %arg2: memref<256x128xf32, #tpu.memory_space<vmem>>, %arg3: memref<1x128xf32, #tpu.memory_space<vmem>>, %arg4: memref<128x512xf32, #tpu.memory_space<vmem>>, %arg5: memref<8x128xf32, #tpu.memory_space<vmem>>) attributes {dimension_semantics = [#tpu.dimension_semantics<parallel>], iteration_bounds = array<i64: 1>, scalar_prefetch = 0 : i64, scratch_operands = 0 : i64, tpu.core_type = #tpu.core_type<tc>, window_params = [{transform_indices = @transform_0, window_bounds = array<i64: 8, 128>}, {pipeline_mode = #tpu.pipeline_mode<synchronous>, transform_indices = @transform_1, window_bounds = array<i64: 256, 128>}, {pipeline_mode = #tpu.pipeline_mode<synchronous>, transform_indices = @transform_2, window_bounds = array<i64: 1, 128>}, {pipeline_mode = #tpu.pipeline_mode<synchronous>, transform_indices = @transform_3, window_bounds = array<i64: 128, 512>}, {transform_indices = @transform_4, window_bounds = array<i64: 8, 128>}]} {
    %c0 = arith.constant 0 : index
    %c0_0 = arith.constant 0 : index
    %0 = vector.load %arg1[%c0, %c0_0] : memref<8x128xf32, #tpu.memory_space<vmem>>, vector<8x128xf32>
    %1 = arith.mulf %0, %0 : vector<8x128xf32>
    %2 = tpu.concatenate %0, %1 in 1 : vector<8x128xf32>, vector<8x128xf32> -> vector<8x256xf32>
    %c0_1 = arith.constant 0 : index
    %c0_2 = arith.constant 0 : index
    %3 = vector.load %arg2[%c0_1, %c0_2] : memref<256x128xf32, #tpu.memory_space<vmem>>, vector<256x128xf32>
    %cst = arith.constant dense<0.000000e+00> : vector<8x128xf32>
    %4 = tpu.matmul %2, %3, %cst {dimension_numbers = #tpu.dot_dimension_numbers<[1], [0], [0], [1], [0, 0, 1, 1], [], []>} : vector<8x256xf32>, vector<256x128xf32>, vector<8x128xf32> -> vector<8x128xf32>
    %c0_3 = arith.constant 0 : index
    %c0_4 = arith.constant 0 : index
    %5 = vector.load %arg3[%c0_3, %c0_4] : memref<1x128xf32, #tpu.memory_space<vmem>>, vector<1x128xf32>
    %6 = vector.broadcast %5 : vector<1x128xf32> to vector<8x128xf32>
    %7 = arith.addf %4, %6 : vector<8x128xf32>
    %c0_5 = arith.constant 0 : index
    %c0_6 = arith.constant 0 : index
    %8 = vector.load %arg4[%c0_5, %c0_6] : memref<128x512xf32, #tpu.memory_space<vmem>>, vector<128x512xf32>
    %cst_7 = arith.constant dense<0.000000e+00> : vector<8x512xf32>
    %9 = tpu.matmul %0, %8, %cst_7 {dimension_numbers = #tpu.dot_dimension_numbers<[1], [0], [0], [1], [0, 0, 1, 1], [], []>} : vector<8x128xf32>, vector<128x512xf32>, vector<8x512xf32> -> vector<8x512xf32>
    %10 = arith.mulf %9, %9 : vector<8x512xf32>
    %11 = vector.extract_strided_slice %10 {offsets = [0, 0], sizes = [8, 128], strides = [1, 1]} : vector<8x512xf32> to vector<8x128xf32>
    %12 = vector.extract_strided_slice %10 {offsets = [0, 128], sizes = [8, 128], strides = [1, 1]} : vector<8x512xf32> to vector<8x128xf32>
    %13 = arith.addf %11, %12 : vector<8x128xf32>
    %14 = vector.extract_strided_slice %10 {offsets = [0, 256], sizes = [8, 128], strides = [1, 1]} : vector<8x512xf32> to vector<8x128xf32>
    %15 = arith.addf %13, %14 : vector<8x128xf32>
    %16 = vector.extract_strided_slice %10 {offsets = [0, 384], sizes = [8, 128], strides = [1, 1]} : vector<8x512xf32> to vector<8x128xf32>
    %17 = arith.addf %15, %16 : vector<8x128xf32>
    %cst_8 = arith.constant 5.000000e-01 : f32
    %18 = vector.broadcast %cst_8 : f32 to vector<8x128xf32>
    %19 = arith.mulf %18, %17 : vector<8x128xf32>
    %20 = arith.addf %7, %19 : vector<8x128xf32>
    %c0_9 = arith.constant 0 : index
    %c0_10 = arith.constant 0 : index
    %21 = vector.load %arg5[%c0_9, %c0_10] : memref<8x128xf32, #tpu.memory_space<vmem>>, vector<8x128xf32>
    tpu.vector_store %arg5[%c0_9, %c0_10], %20 {strides = array<i32>} : memref<8x128xf32, #tpu.memory_space<vmem>>, vector<8x128xf32>,
    return
  }
  func.func @transform_0(%arg0: i32) -> (i32, i32) {
    %c0_i32 = arith.constant 0 : i32
    %c0_i32_0 = arith.constant 0 : i32
    return %arg0, %c0_i32 : i32, i32
  }
  func.func @transform_1(%arg0: i32) -> (i32, i32) {
    %c0_i32 = arith.constant 0 : i32
    %c0_i32_0 = arith.constant 0 : i32
    %c0_i32_1 = arith.constant 0 : i32
    return %c0_i32, %c0_i32_0 : i32, i32
  }
  func.func @transform_2(%arg0: i32) -> (i32, i32) {
    %c0_i32 = arith.constant 0 : i32
    %c0_i32_0 = arith.constant 0 : i32
    %c0_i32_1 = arith.constant 0 : i32
    return %c0_i32, %c0_i32_0 : i32, i32
  }
  func.func @transform_3(%arg0: i32) -> (i32, i32) {
    %c0_i32 = arith.constant 0 : i32
    %c0_i32_0 = arith.constant 0 : i32
    %c0_i32_1 = arith.constant 0 : i32
    return %c0_i32, %c0_i32_0 : i32, i32
  }
  func.func @transform_4(%arg0: i32) -> (i32, i32) {
    %c0_i32 = arith.constant 0 : i32
    %c0_i32_0 = arith.constant 0 : i32
    return %arg0, %c0_i32 : i32, i32
  }
}

module attributes {stable_mosaic.version = 11 : i64} {
  func.func @_fmms_kernel(%arg0: i32, %arg1: memref<8x128xf32, #tpu.memory_space<vmem>>, %arg2: memref<256x128xf32, #tpu.memory_space<vmem>>, %arg3: memref<1x128xf32, #tpu.memory_space<vmem>>, %arg4: memref<128x512xf32, #tpu.memory_space<vmem>>, %arg5: memref<8x128xf32, #tpu.memory_space<vmem>>) attributes {dimension_semantics = [#tpu.dimension_semantics<parallel>], iteration_bounds = array<i64: 1>, scalar_prefetch = 0 : i64, scratch_operands = 0 : i64, tpu.core_type = #tpu.core_type<tc>, window_params = [{transform_indices = @transform_0, window_bounds = array<i64: 8, 128>}, {pipeline_mode = #tpu.pipeline_mode<synchronous>, transform_indices = @transform_1, window_bounds = array<i64: 256, 128>}, {pipeline_mode = #tpu.pipeline_mode<synchronous>, transform_indices = @transform_2, window_bounds = array<i64: 1, 128>}, {pipeline_mode = #tpu.pipeline_mode<synchronous>, transform_indices = @transform_3, window_bounds = array<i64: 128, 512>}, {transform_indices = @transform_4, window_bounds = array<i64: 8, 128>}]} {
    %c0 = arith.constant 0 : index
    %c0_0 = arith.constant 0 : index
    %0 = vector.load %arg1[%c0, %c0_0] : memref<8x128xf32, #tpu.memory_space<vmem>>, vector<8x128xf32>
    %1 = arith.mulf %0, %0 : vector<8x128xf32>
    %2 = tpu.concatenate %0, %1 in 1 : vector<8x128xf32>, vector<8x128xf32> -> vector<8x256xf32>
    %c0_1 = arith.constant 0 : index
    %c0_2 = arith.constant 0 : index
    %3 = vector.load %arg2[%c0_1, %c0_2] : memref<256x128xf32, #tpu.memory_space<vmem>>, vector<256x128xf32>
    %cst = arith.constant dense<0.000000e+00> : vector<8x128xf32>
    %4 = tpu.matmul %2, %3, %cst {dimension_numbers = #tpu.dot_dimension_numbers<[1], [0], [0], [1], [0, 0, 1, 1], [], []>} : vector<8x256xf32>, vector<256x128xf32>, vector<8x128xf32> -> vector<8x128xf32>
    %c0_3 = arith.constant 0 : index
    %c0_4 = arith.constant 0 : index
    %5 = vector.load %arg3[%c0_3, %c0_4] : memref<1x128xf32, #tpu.memory_space<vmem>>, vector<1x128xf32>
    %6 = vector.broadcast %5 : vector<1x128xf32> to vector<8x128xf32>
    %7 = arith.addf %4, %6 : vector<8x128xf32>
    %c0_5 = arith.constant 0 : index
    %c0_6 = arith.constant 0 : index
    %8 = vector.load %arg4[%c0_5, %c0_6] : memref<128x512xf32, #tpu.memory_space<vmem>>, vector<128x512xf32>
    %cst_7 = arith.constant dense<0.000000e+00> : vector<8x512xf32>
    %9 = tpu.matmul %0, %8, %cst_7 {dimension_numbers = #tpu.dot_dimension_numbers<[1], [0], [0], [1], [0, 0, 1, 1], [], []>} : vector<8x128xf32>, vector<128x512xf32>, vector<8x512xf32> -> vector<8x512xf32>
    %10 = arith.mulf %9, %9 : vector<8x512xf32>
    %11 = vector.extract_strided_slice %10 {offsets = [0, 0], sizes = [8, 128], strides = [1, 1]} : vector<8x512xf32> to vector<8x128xf32>
    %12 = vector.extract_strided_slice %10 {offsets = [0, 128], sizes = [8, 128], strides = [1, 1]} : vector<8x512xf32> to vector<8x128xf32>
    %13 = arith.addf %11, %12 : vector<8x128xf32>
    %14 = vector.extract_strided_slice %10 {offsets = [0, 256], sizes = [8, 128], strides = [1, 1]} : vector<8x512xf32> to vector<8x128xf32>
    %15 = arith.addf %13, %14 : vector<8x128xf32>
    %16 = vector.extract_strided_slice %10 {offsets = [0, 384], sizes = [8, 128], strides = [1, 1]} : vector<8x512xf32> to vector<8x128xf32>
    %17 = arith.addf %15, %16 : vector<8x128xf32>
    %cst_8 = arith.constant 5.000000e-01 : f32
    %18 = vector.broadcast %cst_8 : f32 to vector<8x128xf32>
    %19 = arith.mulf %18, %17 : vector<8x128xf32>
    %20 = arith.addf %7, %19 : vector<8x128xf32>
    %c0_9 = arith.constant 0 : index
    %c0_10 = arith.constant 0 : index
    %21 = vector.load %arg5[%c0_9, %c0_10] : memref<8x128xf32, #tpu.memory_space<vmem>>, vector<8x128xf32>
    tpu.vector_store %arg5[%c0_9, %c0_10], %20 {strides = array<i32>} : memref<8x128xf32, #tpu.memory_space<vmem>>, vector<8x128xf32>,
    return
  }
  func.func @transform_0(%arg0: i32) -> (i32, i32) {
    %c0_i32 = arith.constant 0 : i32
    %c0_i32_0 = arith.constant 0 : i32
    return %arg0, %c0_i32 : i32, i32
  }
  func.func @transform_1(%arg0: i32) -> (i32, i32) {
    %c0_i32 = arith.constant 0 : i32
    %c0_i32_0 = arith.constant 0 : i32
    %c0_i32_1 = arith.constant 0 : i32
    return %c0_i32, %c0_i32_0 : i32, i32
  }
  func.func @transform_2(%arg0: i32) -> (i32, i32) {
    %c0_i32 = arith.constant 0 : i32
    %c0_i32_0 = arith.constant 0 : i32
    %c0_i32_1 = arith.constant 0 : i32
    return %c0_i32, %c0_i32_0 : i32, i32
  }
  func.func @transform_3(%arg0: i32) -> (i32, i32) {
    %c0_i32 = arith.constant 0 : i32
    %c0_i32_0 = arith.constant 0 : i32
    %c0_i32_1 = arith.constant 0 : i32
    return %c0_i32, %c0_i32_0 : i32, i32
  }
  func.func @transform_4(%arg0: i32) -> (i32, i32) {
    %c0_i32 = arith.constant 0 : i32
    %c0_i32_0 = arith.constant 0 : i32
    return %arg0, %c0_i32 : i32, i32
  }
}

</mosaic_0001>

<bundles_post_ra>
// kernel: tpu_custom_call.1
= control target key start
LH: loop header
LB: loop body
LE: loop exit
PB: predicated region body
PF: predicated region fallthrough
CT: control target
= control target key end

     0   :  { %9 = vsyncpa [#allocation3], 0  ;;  %s729_s0 = inlined_call_operand.hbm [shape: f32[8,128], index: 0, kind: input, shape index: {}]   ;;  %s730_s1 = inlined_call_operand.hbm [shape: f32[256,128], index: 1, kind: input, shape index: {}]   ;;  %s731_s2 = inlined_call_operand.vmem [shape: f32[1,128], index: 2, kind: input, shape index: {}]   ;;  %s732_s3 = inlined_call_operand.hbm [shape: f32[128,512], index: 3, kind: input, shape index: {}]   ;;  %s733_s4 = inlined_call_operand.hbm [shape: f32[8,128], index: 4, kind: output, shape index: {}]  }
   0x1   :  { %10 = vsyncpa [#allocation6], 0 }
   0x2   :  { %11 = vsyncpa [#allocation4], 0  ;;  %s635_s15 = smov [#allocation5]   ;;  %s541_s19 = scalar_lea.hbm %s730_s1, 4096 }
   0x3   :  { %s27_s16 = sshll.u32 %s635_s15, 4  ;;  %p542_p0 = scmp.ne.s32.totalorder %s730_s1, %s541_s19  ;;  %s28_s16 = int_to_ptr.vmem [resolvable:$true] %s27_s16 }
   0x4   :  { %p545_p1 = scmp.lt.u32.totalorder %s541_s19, %s730_s1 }
   0x6   :  { %p547_p2 = pnand %p545_p1, %p542_p0 }
   0x8   :  { %550 = shalt.err (!%p547_p2)
}
   0x9   :  { %s551_s24 = scalar_lea.vmem %s28_s16, 4096  ;;  %p556_p4 = scmp.lt.s32.totalorder %s28_s16, %s28_s16 }
   0xa   :  { %p552_p3 = scmp.ne.s32.totalorder %s28_s16, %s551_s24  ;;  %p557_p5 = scmp.lt.s32.totalorder %s551_s24, %s551_s24 }
   0xc   :  { %p558_p6 = por %p557_p5, %p556_p4 }
   0xe   :  { %p559_p7 = pnand %p558_p6, %p552_p3 }
  0x10   :  { %562 = shalt.err (!%p559_p7)
}
  0x11   :  { %s636_s25 = smov 128   ;;  %s637_s26 = smov 8  }
  0x12   :  { %33 = dma.hbm_to_vmem [thread:$0]  %s730_s1, 4096, %s28_s16, [#allocation6], %s636_s25, %s636_s25, %s637_s26  }
  0x13   :  { %s638_s29 = smov [#allocation2]   ;;  %s639_s5 = smov [#allocation7]  }
  0x14   :  { %s18_s30 = sshll.u32 %s638_s29, 4  ;;  %s41_s6 = sshll.u32 %s639_s5, 4  ;;  %s19_s30 = int_to_ptr.vmem [resolvable:$true] %s18_s30  ;;  %s42_s6 = int_to_ptr.vmem [resolvable:$true] %s41_s6 }
  0x15   :  { %s563_s9 = scalar_lea.hbm %s729_s0, 128 }
  0x16   :  { %p564_p8 = scmp.ne.s32.totalorder %s729_s0, %s563_s9  ;;  %p567_p9 = scmp.lt.u32.totalorder %s563_s9, %s729_s0 }
  0x18   :  { %p569_p10 = pnand %p567_p9, %p564_p8 }
  0x1a   :  { %572 = shalt.err (!%p569_p10)
}
  0x1b   :  { %s573_s1 = scalar_lea.vmem %s19_s30, 128  ;;  %p578_p12 = scmp.lt.s32.totalorder %s19_s30, %s19_s30 }
  0x1c   :  { %p574_p11 = scmp.ne.s32.totalorder %s19_s30, %s573_s1  ;;  %p579_p13 = scmp.lt.s32.totalorder %s573_s1, %s573_s1 }
  0x1e   :  { %p580_p0 = por %p579_p13, %p578_p12 }
  0x20   :  { %p581_p1 = pnand %p580_p0, %p574_p11 }
  0x22   :  { %584 = shalt.err (!%p581_p1)
}
  0x23   :  { %21 = dma.hbm_to_vmem [thread:$0]  %s729_s0, 128, %s19_s30, [#allocation3]  }
  0x24   :  { %s585_s18 = scalar_lea.hbm %s732_s3, 8192 }
  0x25   :  { %p586_p2 = scmp.ne.s32.totalorder %s732_s3, %s585_s18  ;;  %p589_p3 = scmp.lt.u32.totalorder %s585_s18, %s732_s3 }
  0x27   :  { %p591_p4 = pnand %p589_p3, %p586_p2 }
  0x29   :  { %594 = shalt.err (!%p591_p4)
}
  0x2a   :  { %s595_s23 = scalar_lea.vmem %s42_s6, 8192  ;;  %p600_p6 = scmp.lt.s32.totalorder %s42_s6, %s42_s6 }
  0x2b   :  { %p596_p5 = scmp.ne.s32.totalorder %s42_s6, %s595_s23  ;;  %p601_p7 = scmp.lt.s32.totalorder %s595_s23, %s595_s23 }
  0x2d   :  { %p602_p8 = por %p601_p7, %p600_p6 }
  0x2f   :  { %p603_p9 = pnand %p602_p8, %p596_p5 }
  0x31   :  { %606 = shalt.err (!%p603_p9)
}
  0x32   :  { %s640_s0 = smov 512   ;;  %s641_s24 = smov 32  }
  0x33   :  { %47 = dma.hbm_to_vmem [thread:$0]  %s732_s3, 8192, %s42_s6, [#allocation6], %s640_s0, %s640_s0, %s641_s24  }
  0x34   :  { %629 = dma.done.wait [#allocation3], 128  }
  0x35   :  { %630 = vsyncadd [#allocation3], 4294967168 }
  0x36   :  { %631 = dma.done.wait [#allocation6], 12288  }
  0x37   :  { %632 = vsyncadd [#allocation6], 4294955008  ;;  %v642_v0 = vmov 0.0   ;;  %v75_v1 = vld [vmem:[#allocation5 + $0x80] sm:$0xff]  ;;  %v76_v2 = vld [vmem:[#allocation5 + $0x88] sm:$0xff]  ;;  %s643_s28 = smov [#allocation8]  }
  0x38   :  { %296 = vmatprep.mubr.f32.mxu1 %v642_v0  ;;  %v59_v3 = vld [vmem:[#allocation5] sm:$0xff]  ;;  %v436_v4 = vpack.c.bf16 %v76_v2, %v75_v1  ;;  %v60_v5 = vld [vmem:[#allocation5 + $0x8] sm:$0xff]  ;;  %v77_v6 = vld [vmem:[#allocation5 + $0x90] sm:$0xff]  ;;  %s390_s29 = sshll.u32 %s643_s28, 4  ;;  %s391_s29 = int_to_ptr.vmem [resolvable:$true] %s390_s29 }
  0x39   :  { %v78_v7 = vld [vmem:[#allocation5 + $0x98] sm:$0xff]  ;;  %v438_v8 = vpack.c.bf16 %v60_v5, %v59_v3  ;;  %v61_v10 = vld [vmem:[#allocation5 + $0x10] sm:$0xff]  ;;  %v79_v12 = vld [vmem:[#allocation5 + $0xa0] sm:$0xff]  ;;  %s607_s30 = scalar_lea.vmem %s391_s29, 128  ;;  %p612_p11 = scmp.lt.s32.totalorder %s391_s29, %s391_s29 }
  0x3a   :  { %v440_v9 = vpack.c.bf16 %v78_v7, %v77_v6  ;;  %v62_v11 = vld [vmem:[#allocation5 + $0x18] sm:$0xff]  ;;  %437 = vmatprep.subr.bf16.mxu0 %v436_v4  ;;  %v80_v13 = vld [vmem:[#allocation5 + $0xa8] sm:$0xff]  ;;  %v63_v16 = vld [vmem:[#allocation5 + $0x20] sm:$0xff]  ;;  %p608_p10 = scmp.ne.s32.totalorder %s391_s29, %s607_s30  ;;  %p613_p12 = scmp.lt.s32.totalorder %s607_s30, %s607_s30 }
  0x3b   :  { %439 = vmatpush3.bf16.msra.mxu0 %v438_v8  ;;  %v442_v14 = vpack.c.bf16 %v62_v11, %v61_v10  ;;  %v444_v15 = vpack.c.bf16 %v80_v13, %v79_v12  ;;  %v64_v17 = vld [vmem:[#allocation5 + $0x28] sm:$0xff]  ;;  %v81_v18 = vld [vmem:[#allocation5 + $0xb0] sm:$0xff]  ;;  %v82_v19 = vld [vmem:[#allocation5 + $0xb8] sm:$0xff] }
  0x3c   :  { %441 = vmatprep.subr.bf16.mxu0 %v440_v9  ;;  %v446_v20 = vpack.c.bf16 %v64_v17, %v63_v16  ;;  %v448_v21 = vpack.c.bf16 %v82_v19, %v81_v18  ;;  %v65_v22 = vld [vmem:[#allocation5 + $0x30] sm:$0xff]  ;;  %v66_v23 = vld [vmem:[#allocation5 + $0x38] sm:$0xff]  ;;  %v83_v24 = vld [vmem:[#allocation5 + $0xc0] sm:$0xff]  ;;  %p614_p13 = por %p613_p12, %p612_p11 }
  0x3d   :  { %v84_v25 = vld [vmem:[#allocation5 + $0xc8] sm:$0xff]  ;;  %v168_v29 = vld [vmem:[#allocation7] sm:$0xff]  ;;  %v450_v31 = vpack.c.bf16 %v66_v23, %v65_v22  ;;  %v706_v33 = vld [vmem:[#allocation2] sm:$0xff] }
  0x3e   :  { %v169_v26 = vld [vmem:[#allocation7 + $0x8] sm:$0xff]  ;;  %v172_v30 = vld [vmem:[#allocation7 + $0x20] sm:$0xff]  ;;  %v452_v36 = vpack.c.bf16 %v84_v25, %v83_v24  ;;  %v58_v39 = vmul.f32 %v706_v33, %v706_v33  ;;  %v85_v42 = vld [vmem:[#allocation5 + $0xd0] sm:$0xff]  ;;  %p615_p0 = pnand %p614_p13, %p608_p10 }
  0x3f   :  { %443 = vmatpush3.bf16.msra.mxu0 %v442_v14  ;;  %v173_v27 = vld [vmem:[#allocation7 + $0x28] sm:$0xff]  ;;  %v470_v32 = vpack.c.bf16 %v172_v30, %v168_v29  ;;  %v67_v37 = vld [vmem:[#allocation5 + $0x40] sm:$0xff]  ;;  %v86_v43 = vld [vmem:[#allocation5 + $0xd8] sm:$0xff] }
  0x40   :  { %445 = vmatprep.subr.bf16.mxu0 %v444_v15  ;;  %v468_v28 = vpack.c.bf16 %v173_v27, %v169_v26  ;;  %v177_v34 = vld [vmem:[#allocation7 + $0x48] sm:$0xff]  ;;  %v176_v41 = vld [vmem:[#allocation7 + $0x40] sm:$0xff]  ;;  %162 = vmatprep.mubr.f32.mxu0 %v58_v39  ;;  %v456_v52 = vpack.c.bf16 %v86_v43, %v85_v42  ;;  %v69_v53 = vld [vmem:[#allocation5 + $0x50] sm:$0xff] }
  0x41   :  { %v181_v35 = vld [vmem:[#allocation7 + $0x68] sm:$0xff]  ;;  %v180_v44 = vld [vmem:[#allocation7 + $0x60] sm:$0xff]  ;;  %v70_v54 = vld [vmem:[#allocation5 + $0x58] sm:$0xff] }
  0x42   :  { %v68_v38 = vld [vmem:[#allocation5 + $0x48] sm:$0xff]  ;;  %469 = vmatprep.subr.bf16.mxu1 %v468_v28  ;;  %v472_v40 = vpack.c.bf16 %v181_v35, %v177_v34  ;;  %v474_v45 = vpack.c.bf16 %v180_v44, %v176_v41  ;;  %v184_v50 = vld [vmem:[#allocation7 + $0x80] sm:$0xff]  ;;  %v458_v63 = vpack.c.bf16 %v70_v54, %v69_v53  ;;  %v89_v6 = vld [vmem:[#allocation5 + $0xf0] sm:$0xff] }
  0x43   :  { %447 = vmatpush3.bf16.msra.mxu0 %v446_v20  ;;  %471 = vmatpush1.bf16.msra.mxu1 %v470_v32  ;;  %v185_v46 = vld [vmem:[#allocation7 + $0x88] sm:$0xff]  ;;  %v454_v48 = vpack.c.bf16 %v68_v38, %v67_v37  ;;  %v188_v51 = vld [vmem:[#allocation7 + $0xa0] sm:$0xff]  ;;  %v90_v7 = vld [vmem:[#allocation5 + $0xf8] sm:$0xff] }
  0x44   :  { %449 = vmatprep.subr.bf16.mxu0 %v448_v21  ;;  %473 = vmatprep.subr.bf16.mxu1 %v472_v40  ;;  %v189_v47 = vld [vmem:[#allocation7 + $0xa8] sm:$0xff]  ;;  %v87_v56 = vld [vmem:[#allocation5 + $0xe0] sm:$0xff]  ;;  %v478_v58 = vpack.c.bf16 %v188_v51, %v184_v50  ;;  %v464_v15 = vpack.c.bf16 %v90_v7, %v89_v6  ;;  %v73_v16 = vld [vmem:[#allocation5 + $0x70] sm:$0xff] }
  0x45   :  { %v476_v49 = vpack.c.bf16 %v189_v47, %v185_v46  ;;  %v193_v55 = vld [vmem:[#allocation7 + $0xc8] sm:$0xff]  ;;  %v192_v61 = vld [vmem:[#allocation7 + $0xc0] sm:$0xff]  ;;  %v74_v17 = vld [vmem:[#allocation5 + $0x78] sm:$0xff] }
  0x46   :  { %v88_v57 = vld [vmem:[#allocation5 + $0xe8] sm:$0xff]  ;;  %v196_v62 = vld [vmem:[#allocation7 + $0xe0] sm:$0xff]  ;;  %v171_v18 = vld [vmem:[#allocation7 + $0x18] sm:$0xff]  ;;  %v466_v24 = vpack.c.bf16 %v74_v17, %v73_v16 }
  0x47   :  { %451 = vmatpush3.bf16.msra.mxu0 %v450_v31  ;;  %475 = vmatpush1.bf16.msra.mxu1 %v474_v45  ;;  %v197_v59 = vld [vmem:[#allocation7 + $0xe8] sm:$0xff]  ;;  %v460_v3 = vpack.c.bf16 %v88_v57, %v87_v56  ;;  %v71_v4 = vld [vmem:[#allocation5 + $0x60] sm:$0xff]  ;;  %v482_v8 = vpack.c.bf16 %v196_v62, %v192_v61  ;;  %v175_v19 = vld [vmem:[#allocation7 + $0x38] sm:$0xff] }
  0x48   :  { %453 = vmatprep.subr.bf16.mxu0 %v452_v36  ;;  %477 = vmatprep.subr.bf16.mxu1 %v476_v49  ;;  %v480_v60 = vpack.c.bf16 %v197_v59, %v193_v55  ;;  %v201_v1 = vld [vmem:[#allocation7 + $0x108] sm:$0xff]  ;;  %v200_v10 = vld [vmem:[#allocation7 + $0x100] sm:$0xff]  ;;  %v500_v27 = vpack.c.bf16 %v175_v19, %v171_v18  ;;  %v170_v28 = vld [vmem:[#allocation7 + $0x10] sm:$0xff] }
  0x49   :  { %v205_v2 = vld [vmem:[#allocation7 + $0x128] sm:$0xff]  ;;  %v204_v11 = vld [vmem:[#allocation7 + $0x120] sm:$0xff]  ;;  %v174_v29 = vld [vmem:[#allocation7 + $0x30] sm:$0xff] }
  0x4a   :  { %v72_v5 = vld [vmem:[#allocation5 + $0x68] sm:$0xff]  ;;  %v484_v9 = vpack.c.bf16 %v205_v2, %v201_v1  ;;  %v486_v20 = vpack.c.bf16 %v204_v11, %v200_v10  ;;  %v208_v22 = vld [vmem:[#allocation7 + $0x140] sm:$0xff]  ;;  %v179_v30 = vld [vmem:[#allocation7 + $0x58] sm:$0xff]  ;;  %v502_v37 = vpack.c.bf16 %v174_v29, %v170_v28 }
  0x4b   :  { %455 = vmatpush3.bf16.msra.mxu0 %v454_v48  ;;  %479 = vmatpush1.bf16.msra.mxu1 %v478_v58  ;;  %v462_v12 = vpack.c.bf16 %v72_v5, %v71_v4  ;;  %v209_v13 = vld [vmem:[#allocation7 + $0x148] sm:$0xff]  ;;  %v212_v23 = vld [vmem:[#allocation7 + $0x160] sm:$0xff]  ;;  %v183_v31 = vld [vmem:[#allocation7 + $0x78] sm:$0xff] }
  0x4c   :  { %457 = vmatprep.subr.bf16.mxu0 %v456_v52  ;;  %481 = vmatprep.subr.bf16.mxu1 %v480_v60  ;;  %v213_v14 = vld [vmem:[#allocation7 + $0x168] sm:$0xff]  ;;  %v490_v32 = vpack.c.bf16 %v212_v23, %v208_v22  ;;  %v216_v35 = vld [vmem:[#allocation7 + $0x180] sm:$0xff]  ;;  %v504_v40 = vpack.c.bf16 %v183_v31, %v179_v30  ;;  %v178_v41 = vld [vmem:[#allocation7 + $0x50] sm:$0xff] }
  0x4d   :  { %v488_v21 = vpack.c.bf16 %v213_v14, %v209_v13  ;;  %v217_v25 = vld [vmem:[#allocation7 + $0x188] sm:$0xff]  ;;  %v220_v36 = vld [vmem:[#allocation7 + $0x1a0] sm:$0xff]  ;;  %v182_v42 = vld [vmem:[#allocation7 + $0x70] sm:$0xff] }
  0x4e   :  { %v221_v26 = vld [vmem:[#allocation7 + $0x1a8] sm:$0xff]  ;;  %v187_v43 = vld [vmem:[#allocation7 + $0x98] sm:$0xff]  ;;  %v494_v45 = vpack.c.bf16 %v220_v36, %v216_v35  ;;  %v224_v47 = vld [vmem:[#allocation7 + $0x1c0] sm:$0xff]  ;;  %v506_v49 = vpack.c.bf16 %v182_v42, %v178_v41 }
  0x4f   :  { %459 = vmatpush3.bf16.msra.mxu0 %v458_v63  ;;  %483 = vmatpush1.bf16.msra.mxu1 %v482_v8  ;;  %v492_v34 = vpack.c.bf16 %v221_v26, %v217_v25  ;;  %v225_v38 = vld [vmem:[#allocation7 + $0x1c8] sm:$0xff]  ;;  %v191_v44 = vld [vmem:[#allocation7 + $0xb8] sm:$0xff]  ;;  %v228_v48 = vld [vmem:[#allocation7 + $0x1e0] sm:$0xff] }
  0x50   :  { %461 = vmatprep.subr.bf16.mxu0 %v460_v3  ;;  %485 = vmatprep.subr.bf16.mxu1 %v484_v9  ;;  %v229_v39 = vld [vmem:[#allocation7 + $0x1e8] sm:$0xff]  ;;  %v508_v50 = vpack.c.bf16 %v191_v44, %v187_v43  ;;  %v186_v51 = vld [vmem:[#allocation7 + $0x90] sm:$0xff]  ;;  %v195_v53 = vld [vmem:[#allocation7 + $0xd8] sm:$0xff]  ;;  %v498_v55 = vpack.c.bf16 %v228_v48, %v224_v47 }
  0x51   :  { %v496_v46 = vpack.c.bf16 %v229_v39, %v225_v38  ;;  %v190_v52 = vld [vmem:[#allocation7 + $0xb0] sm:$0xff]  ;;  %v199_v54 = vld [vmem:[#allocation7 + $0xf8] sm:$0xff] }
  0x52   :  { %v510_v56 = vpack.c.bf16 %v190_v52, %v186_v51  ;;  %v512_v57 = vpack.c.bf16 %v199_v54, %v195_v53  ;;  %v194_v58 = vld [vmem:[#allocation7 + $0xd0] sm:$0xff]  ;;  %v203_v60 = vld [vmem:[#allocation7 + $0x118] sm:$0xff] }
  0x53   :  { %463 = vmatpush3.bf16.msra.mxu0 %v462_v12  ;;  %487 = vmatpush1.bf16.msra.mxu1 %v486_v20  ;;  %v198_v59 = vld [vmem:[#allocation7 + $0xf0] sm:$0xff]  ;;  %v207_v61 = vld [vmem:[#allocation7 + $0x138] sm:$0xff] }
  0x54   :  { %465 = vmatprep.subr.bf16.mxu0 %v464_v15  ;;  %489 = vmatprep.subr.bf16.mxu1 %v488_v21  ;;  %v516_v62 = vpack.c.bf16 %v207_v61, %v203_v60  ;;  %v202_v63 = vld [vmem:[#allocation7 + $0x110] sm:$0xff]  ;;  %v211_v2 = vld [vmem:[#allocation7 + $0x158] sm:$0xff] }
  0x55   :  { %v206_v1 = vld [vmem:[#allocation7 + $0x130] sm:$0xff]  ;;  %v215_v3 = vld [vmem:[#allocation7 + $0x178] sm:$0xff] }
  0x56   :  { %v518_v4 = vpack.c.bf16 %v206_v1, %v202_v63  ;;  %v520_v5 = vpack.c.bf16 %v215_v3, %v211_v2  ;;  %v210_v6 = vld [vmem:[#allocation7 + $0x150] sm:$0xff]  ;;  %v219_v8 = vld [vmem:[#allocation7 + $0x198] sm:$0xff] }
  0x57   :  { %467 = vmatpush3.bf16.msra.mxu0 %v466_v24  ;;  %491 = vmatpush1.bf16.msra.mxu1 %v490_v32  ;;  %v214_v7 = vld [vmem:[#allocation7 + $0x170] sm:$0xff]  ;;  %v223_v9 = vld [vmem:[#allocation7 + $0x1b8] sm:$0xff] }
  0x58   :  { %501 = vmatprep.subr.bf16.mxu0 %v500_v27  ;;  %493 = vmatprep.subr.bf16.mxu1 %v492_v34  ;;  %v522_v10 = vpack.c.bf16 %v214_v7, %v210_v6  ;;  %v524_v11 = vpack.c.bf16 %v223_v9, %v219_v8  ;;  %v218_v12 = vld [vmem:[#allocation7 + $0x190] sm:$0xff]  ;;  %v227_v14 = vld [vmem:[#allocation7 + $0x1d8] sm:$0xff] }
  0x59   :  { %v222_v13 = vld [vmem:[#allocation7 + $0x1b0] sm:$0xff]  ;;  %v231_v15 = vld [vmem:[#allocation7 + $0x1f8] sm:$0xff] }
  0x5a   :  { %163 = vmatmul.mubr.f32.vlgmr.msra.gmra.mrb[0].mxu0 %v706_v33  ;;  %v526_v16 = vpack.c.bf16 %v222_v13, %v218_v12  ;;  %v528_v17 = vpack.c.bf16 %v231_v15, %v227_v14  ;;  %v226_v18 = vld [vmem:[#allocation7 + $0x1d0] sm:$0xff]  ;;  %v400_v35 = vld [vmem:[%s731_s2] ss:$0 sm:$0xff] }
  0x5b   :  { %503 = vmatpush1.bf16.msra.mxu0 %v502_v37  ;;  %367 = vmatprep.mubr.f32.mxu0 %v642_v0  ;;  %v514_v0 = vpack.c.bf16 %v198_v59, %v194_v58  ;;  %v230_v19 = vld [vmem:[#allocation7 + $0x1f0] sm:$0xff] }
  0x5c   :  { %505 = vmatprep.subr.bf16.mxu0 %v504_v40  ;;  %495 = vmatpush1.bf16.msra.mxu1 %v494_v45  ;;  %v530_v20 = vpack.c.bf16 %v230_v19, %v226_v18 }
  0x5d   :  { %497 = vmatprep.subr.bf16.mxu1 %v496_v46 }
  0x5f   :  { %507 = vmatpush1.bf16.msra.mxu0 %v506_v49 }
  0x60   :  { %509 = vmatprep.subr.bf16.mxu0 %v508_v50  ;;  %499 = vmatpush1.bf16.msra.mxu1 %v498_v55 }
  0x63   :  { %511 = vmatpush1.bf16.msra.mxu0 %v510_v56  ;;  %297 = vmatmul.mubr.f32.vlgmr.msra.gmra.mrb[0].mxu1 %v706_v33 }
  0x64   :  { %513 = vmatprep.subr.bf16.mxu0 %v512_v57 }
  0x67   :  { %515 = vmatpush1.bf16.msra.mxu0 %v514_v0 }
  0x68   :  { %517 = vmatprep.subr.bf16.mxu0 %v516_v62 }
  0x6b   :  { %519 = vmatpush1.bf16.msra.mxu0 %v518_v4 }
  0x6c   :  { %521 = vmatprep.subr.bf16.mxu0 %v520_v5 }
  0x6f   :  { %523 = vmatpush1.bf16.msra.mxu0 %v522_v10 }
  0x70   :  { %525 = vmatprep.subr.bf16.mxu0 %v524_v11 }
  0x73   :  { %527 = vmatpush1.bf16.msra.mxu0 %v526_v16 }
  0x74   :  { %529 = vmatprep.subr.bf16.mxu0 %v528_v17 }
  0x77   :  { %531 = vmatpush1.bf16.msra.mxu0 %v530_v20 }
  0x7a   :  { %368 = vmatmul.mubr.f32.vlgmr.msra.gmra.mrb[2].mxu0 %v706_v33 }
 0x12d   :  { %v433_v21 = vpop.f32.mrb[0].mxu0 }
 0x12e   :  { %v434_v22 = vpop.f32.mrb[1].mxu0 }
 0x12f   :  { %v435_v23 = vadd.f32 %v434_v22, %v433_v21 }
 0x131   :  { %v165_v33 = vadd.f32 %v435_v23, %v400_v35 }
 0x136   :  { %v298_v24 = vpop.f32.mrb[0].mxu1 }
 0x137   :  { %v374_v25 = vmul.f32 %v298_v24, %v298_v24  ;;  %v300_v26 = vpop.f32.mrb[1].mxu1 }
 0x138   :  { %v375_v27 = vmul.f32 %v300_v26, %v300_v26 }
 0x13a   :  { %v378_v28 = vadd.f32 %v375_v27, %v374_v25 }
 0x14d   :  { %v369_v29 = vpop.f32.mrb[2].mxu0 }
 0x14e   :  { %v376_v30 = vmul.f32 %v369_v29, %v369_v29  ;;  %v371_v31 = vpop.f32.mrb[3].mxu0 }
 0x14f   :  { %v377_v32 = vmul.f32 %v371_v31, %v371_v31 }
 0x150   :  { %v379_v34 = vadd.f32 %v378_v28, %v376_v30 }
 0x152   :  { %v380_v36 = vadd.f32 %v379_v34, %v377_v32 }
 0x154   :  { %v381_v37 = vmul.f32 0.5, %v380_v36 }
 0x156   :  { %v382_v38 = vadd.f32 %v381_v37, %v165_v33 }
 0x158   :  { %383 = vst [vmem:[#allocation8] sm:$0xff] %v382_v38 }
 0x159   :  { %618 = shalt.err (!%p615_p0)
}
 0x15a   :  { %s619_s7 = scalar_lea.hbm %s733_s4, 128 }
 0x15b   :  { %p620_p1 = scmp.ne.s32.totalorder %s733_s4, %s619_s7  ;;  %p623_p2 = scmp.lt.u32.totalorder %s619_s7, %s733_s4 }
 0x15d   :  { %p625_p3 = pnand %p623_p2, %p620_p1 }
 0x15f   :  { %628 = shalt.err (!%p625_p3)
}
 0x160   :  { %393 = dma.vmem_to_hbm [thread:$0]  %s391_s29, 128, %s733_s4, [#allocation4]  }
 0x161   :  { %633 = dma.done.wait [#allocation4], 128  }
 0x162   :  { %634 = vsyncadd [#allocation4], 4294967168 }
 0x163   :  { %397 = vsyncpa [#allocation3], 1 }
 0x164   :  { %398 = vsyncpa [#allocation6], 1 }
 0x165   :  { %399 = vsyncpa [#allocation4], 1 }

// kernel: tpu_custom_call.1
= control target key start
LH: loop header
LB: loop body
LE: loop exit
PB: predicated region body
PF: predicated region fallthrough
CT: control target
= control target key end

     0   :  { %9 = vsyncpa [#allocation3], 0  ;;  %s729_s0 = inlined_call_operand.hbm [shape: f32[8,128], index: 0, kind: input, shape index: {}]   ;;  %s730_s1 = inlined_call_operand.hbm [shape: f32[256,128], index: 1, kind: input, shape index: {}]   ;;  %s731_s2 = inlined_call_operand.vmem [shape: f32[1,128], index: 2, kind: input, shape index: {}]   ;;  %s732_s3 = inlined_call_operand.hbm [shape: f32[128,512], index: 3, kind: input, shape index: {}]   ;;  %s733_s4 = inlined_call_operand.hbm [shape: f32[8,128], index: 4, kind: output, shape index: {}]  }
   0x1   :  { %10 = vsyncpa [#allocation6], 0 }
   0x2   :  { %11 = vsyncpa [#allocation4], 0  ;;  %s635_s15 = smov [#allocation5]   ;;  %s541_s19 = scalar_lea.hbm %s730_s1, 4096 }
   0x3   :  { %s27_s16 = sshll.u32 %s635_s15, 4  ;;  %p542_p0 = scmp.ne.s32.totalorder %s730_s1, %s541_s19  ;;  %s28_s16 = int_to_ptr.vmem [resolvable:$true] %s27_s16 }
   0x4   :  { %p545_p1 = scmp.lt.u32.totalorder %s541_s19, %s730_s1 }
   0x6   :  { %p547_p2 = pnand %p545_p1, %p542_p0 }
   0x8   :  { %550 = shalt.err (!%p547_p2)
}
   0x9   :  { %s551_s24 = scalar_lea.vmem %s28_s16, 4096  ;;  %p556_p4 = scmp.lt.s32.totalorder %s28_s16, %s28_s16 }
   0xa   :  { %p552_p3 = scmp.ne.s32.totalorder %s28_s16, %s551_s24  ;;  %p557_p5 = scmp.lt.s32.totalorder %s551_s24, %s551_s24 }
   0xc   :  { %p558_p6 = por %p557_p5, %p556_p4 }
   0xe   :  { %p559_p7 = pnand %p558_p6, %p552_p3 }
  0x10   :  { %562 = shalt.err (!%p559_p7)
}
  0x11   :  { %s636_s25 = smov 128   ;;  %s637_s26 = smov 8  }
  0x12   :  { %33 = dma.hbm_to_vmem [thread:$0]  %s730_s1, 4096, %s28_s16, [#allocation6], %s636_s25, %s636_s25, %s637_s26  }
  0x13   :  { %s638_s29 = smov [#allocation2]   ;;  %s639_s5 = smov [#allocation7]  }
  0x14   :  { %s18_s30 = sshll.u32 %s638_s29, 4  ;;  %s41_s6 = sshll.u32 %s639_s5, 4  ;;  %s19_s30 = int_to_ptr.vmem [resolvable:$true] %s18_s30  ;;  %s42_s6 = int_to_ptr.vmem [resolvable:$true] %s41_s6 }
  0x15   :  { %s563_s9 = scalar_lea.hbm %s729_s0, 128 }
  0x16   :  { %p564_p8 = scmp.ne.s32.totalorder %s729_s0, %s563_s9  ;;  %p567_p9 = scmp.lt.u32.totalorder %s563_s9, %s729_s0 }
  0x18   :  { %p569_p10 = pnand %p567_p9, %p564_p8 }
  0x1a   :  { %572 = shalt.err (!%p569_p10)
}
  0x1b   :  { %s573_s1 = scalar_lea.vmem %s19_s30, 128  ;;  %p578_p12 = scmp.lt.s32.totalorder %s19_s30, %s19_s30 }
  0x1c   :  { %p574_p11 = scmp.ne.s32.totalorder %s19_s30, %s573_s1  ;;  %p579_p13 = scmp.lt.s32.totalorder %s573_s1, %s573_s1 }
  0x1e   :  { %p580_p0 = por %p579_p13, %p578_p12 }
  0x20   :  { %p581_p1 = pnand %p580_p0, %p574_p11 }
  0x22   :  { %584 = shalt.err (!%p581_p1)
}
  0x23   :  { %21 = dma.hbm_to_vmem [thread:$0]  %s729_s0, 128, %s19_s30, [#allocation3]  }
  0x24   :  { %s585_s18 = scalar_lea.hbm %s732_s3, 8192 }
  0x25   :  { %p586_p2 = scmp.ne.s32.totalorder %s732_s3, %s585_s18  ;;  %p589_p3 = scmp.lt.u32.totalorder %s585_s18, %s732_s3 }
  0x27   :  { %p591_p4 = pnand %p589_p3, %p586_p2 }
  0x29   :  { %594 = shalt.err (!%p591_p4)
}
  0x2a   :  { %s595_s23 = scalar_lea.vmem %s42_s6, 8192  ;;  %p600_p6 = scmp.lt.s32.totalorder %s42_s6, %s42_s6 }
  0x2b   :  { %p596_p5 = scmp.ne.s32.totalorder %s42_s6, %s595_s23  ;;  %p601_p7 = scmp.lt.s32.totalorder %s595_s23, %s595_s23 }
  0x2d   :  { %p602_p8 = por %p601_p7, %p600_p6 }
  0x2f   :  { %p603_p9 = pnand %p602_p8, %p596_p5 }
  0x31   :  { %606 = shalt.err (!%p603_p9)
}
  0x32   :  { %s640_s0 = smov 512   ;;  %s641_s24 = smov 32  }
  0x33   :  { %47 = dma.hbm_to_vmem [thread:$0]  %s732_s3, 8192, %s42_s6, [#allocation6], %s640_s0, %s640_s0, %s641_s24  }
  0x34   :  { %629 = dma.done.wait [#allocation3], 128  }
  0x35   :  { %630 = vsyncadd [#allocation3], 4294967168 }
  0x36   :  { %631 = dma.done.wait [#allocation6], 12288  }
  0x37   :  { %632 = vsyncadd [#allocation6], 4294955008  ;;  %v642_v0 = vmov 0.0   ;;  %v75_v1 = vld [vmem:[#allocation5 + $0x80] sm:$0xff]  ;;  %v76_v2 = vld [vmem:[#allocation5 + $0x88] sm:$0xff]  ;;  %s643_s28 = smov [#allocation8]  }
  0x38   :  { %296 = vmatprep.mubr.f32.mxu1 %v642_v0  ;;  %v59_v3 = vld [vmem:[#allocation5] sm:$0xff]  ;;  %v436_v4 = vpack.c.bf16 %v76_v2, %v75_v1  ;;  %v60_v5 = vld [vmem:[#allocation5 + $0x8] sm:$0xff]  ;;  %v77_v6 = vld [vmem:[#allocation5 + $0x90] sm:$0xff]  ;;  %s390_s29 = sshll.u32 %s643_s28, 4  ;;  %s391_s29 = int_to_ptr.vmem [resolvable:$true] %s390_s29 }
  0x39   :  { %v78_v7 = vld [vmem:[#allocation5 + $0x98] sm:$0xff]  ;;  %v438_v8 = vpack.c.bf16 %v60_v5, %v59_v3  ;;  %v61_v10 = vld [vmem:[#allocation5 + $0x10] sm:$0xff]  ;;  %v79_v12 = vld [vmem:[#allocation5 + $0xa0] sm:$0xff]  ;;  %s607_s30 = scalar_lea.vmem %s391_s29, 128  ;;  %p612_p11 = scmp.lt.s32.totalorder %s391_s29, %s391_s29 }
  0x3a   :  { %v440_v9 = vpack.c.bf16 %v78_v7, %v77_v6  ;;  %v62_v11 = vld [vmem:[#allocation5 + $0x18] sm:$0xff]  ;;  %437 = vmatprep.subr.bf16.mxu0 %v436_v4  ;;  %v80_v13 = vld [vmem:[#allocation5 + $0xa8] sm:$0xff]  ;;  %v63_v16 = vld [vmem:[#allocation5 + $0x20] sm:$0xff]  ;;  %p608_p10 = scmp.ne.s32.totalorder %s391_s29, %s607_s30  ;;  %p613_p12 = scmp.lt.s32.totalorder %s607_s30, %s607_s30 }
  0x3b   :  { %439 = vmatpush3.bf16.msra.mxu0 %v438_v8  ;;  %v442_v14 = vpack.c.bf16 %v62_v11, %v61_v10  ;;  %v444_v15 = vpack.c.bf16 %v80_v13, %v79_v12  ;;  %v64_v17 = vld [vmem:[#allocation5 + $0x28] sm:$0xff]  ;;  %v81_v18 = vld [vmem:[#allocation5 + $0xb0] sm:$0xff]  ;;  %v82_v19 = vld [vmem:[#allocation5 + $0xb8] sm:$0xff] }
  0x3c   :  { %441 = vmatprep.subr.bf16.mxu0 %v440_v9  ;;  %v446_v20 = vpack.c.bf16 %v64_v17, %v63_v16  ;;  %v448_v21 = vpack.c.bf16 %v82_v19, %v81_v18  ;;  %v65_v22 = vld [vmem:[#allocation5 + $0x30] sm:$0xff]  ;;  %v66_v23 = vld [vmem:[#allocation5 + $0x38] sm:$0xff]  ;;  %v83_v24 = vld [vmem:[#allocation5 + $0xc0] sm:$0xff]  ;;  %p614_p13 = por %p613_p12, %p612_p11 }
  0x3d   :  { %v84_v25 = vld [vmem:[#allocation5 + $0xc8] sm:$0xff]  ;;  %v168_v29 = vld [vmem:[#allocation7] sm:$0xff]  ;;  %v450_v31 = vpack.c.bf16 %v66_v23, %v65_v22  ;;  %v706_v33 = vld [vmem:[#allocation2] sm:$0xff] }
  0x3e   :  { %v169_v26 = vld [vmem:[#allocation7 + $0x8] sm:$0xff]  ;;  %v172_v30 = vld [vmem:[#allocation7 + $0x20] sm:$0xff]  ;;  %v452_v36 = vpack.c.bf16 %v84_v25, %v83_v24  ;;  %v58_v39 = vmul.f32 %v706_v33, %v706_v33  ;;  %v85_v42 = vld [vmem:[#allocation5 + $0xd0] sm:$0xff]  ;;  %p615_p0 = pnand %p614_p13, %p608_p10 }
  0x3f   :  { %443 = vmatpush3.bf16.msra.mxu0 %v442_v14  ;;  %v173_v27 = vld [vmem:[#allocation7 + $0x28] sm:$0xff]  ;;  %v470_v32 = vpack.c.bf16 %v172_v30, %v168_v29  ;;  %v67_v37 = vld [vmem:[#allocation5 + $0x40] sm:$0xff]  ;;  %v86_v43 = vld [vmem:[#allocation5 + $0xd8] sm:$0xff] }
  0x40   :  { %445 = vmatprep.subr.bf16.mxu0 %v444_v15  ;;  %v468_v28 = vpack.c.bf16 %v173_v27, %v169_v26  ;;  %v177_v34 = vld [vmem:[#allocation7 + $0x48] sm:$0xff]  ;;  %v176_v41 = vld [vmem:[#allocation7 + $0x40] sm:$0xff]  ;;  %162 = vmatprep.mubr.f32.mxu0 %v58_v39  ;;  %v456_v52 = vpack.c.bf16 %v86_v43, %v85_v42  ;;  %v69_v53 = vld [vmem:[#allocation5 + $0x50] sm:$0xff] }
  0x41   :  { %v181_v35 = vld [vmem:[#allocation7 + $0x68] sm:$0xff]  ;;  %v180_v44 = vld [vmem:[#allocation7 + $0x60] sm:$0xff]  ;;  %v70_v54 = vld [vmem:[#allocation5 + $0x58] sm:$0xff] }
  0x42   :  { %v68_v38 = vld [vmem:[#allocation5 + $0x48] sm:$0xff]  ;;  %469 = vmatprep.subr.bf16.mxu1 %v468_v28  ;;  %v472_v40 = vpack.c.bf16 %v181_v35, %v177_v34  ;;  %v474_v45 = vpack.c.bf16 %v180_v44, %v176_v41  ;;  %v184_v50 = vld [vmem:[#allocation7 + $0x80] sm:$0xff]  ;;  %v458_v63 = vpack.c.bf16 %v70_v54, %v69_v53  ;;  %v89_v6 = vld [vmem:[#allocation5 + $0xf0] sm:$0xff] }
  0x43   :  { %447 = vmatpush3.bf16.msra.mxu0 %v446_v20  ;;  %471 = vmatpush1.bf16.msra.mxu1 %v470_v32  ;;  %v185_v46 = vld [vmem:[#allocation7 + $0x88] sm:$0xff]  ;;  %v454_v48 = vpack.c.bf16 %v68_v38, %v67_v37  ;;  %v188_v51 = vld [vmem:[#allocation7 + $0xa0] sm:$0xff]  ;;  %v90_v7 = vld [vmem:[#allocation5 + $0xf8] sm:$0xff] }
  0x44   :  { %449 = vmatprep.subr.bf16.mxu0 %v448_v21  ;;  %473 = vmatprep.subr.bf16.mxu1 %v472_v40  ;;  %v189_v47 = vld [vmem:[#allocation7 + $0xa8] sm:$0xff]  ;;  %v87_v56 = vld [vmem:[#allocation5 + $0xe0] sm:$0xff]  ;;  %v478_v58 = vpack.c.bf16 %v188_v51, %v184_v50  ;;  %v464_v15 = vpack.c.bf16 %v90_v7, %v89_v6  ;;  %v73_v16 = vld [vmem:[#allocation5 + $0x70] sm:$0xff] }
  0x45   :  { %v476_v49 = vpack.c.bf16 %v189_v47, %v185_v46  ;;  %v193_v55 = vld [vmem:[#allocation7 + $0xc8] sm:$0xff]  ;;  %v192_v61 = vld [vmem:[#allocation7 + $0xc0] sm:$0xff]  ;;  %v74_v17 = vld [vmem:[#allocation5 + $0x78] sm:$0xff] }
  0x46   :  { %v88_v57 = vld [vmem:[#allocation5 + $0xe8] sm:$0xff]  ;;  %v196_v62 = vld [vmem:[#allocation7 + $0xe0] sm:$0xff]  ;;  %v171_v18 = vld [vmem:[#allocation7 + $0x18] sm:$0xff]  ;;  %v466_v24 = vpack.c.bf16 %v74_v17, %v73_v16 }
  0x47   :  { %451 = vmatpush3.bf16.msra.mxu0 %v450_v31  ;;  %475 = vmatpush1.bf16.msra.mxu1 %v474_v45  ;;  %v197_v59 = vld [vmem:[#allocation7 + $0xe8] sm:$0xff]  ;;  %v460_v3 = vpack.c.bf16 %v88_v57, %v87_v56  ;;  %v71_v4 = vld [vmem:[#allocation5 + $0x60] sm:$0xff]  ;;  %v482_v8 = vpack.c.bf16 %v196_v62, %v192_v61  ;;  %v175_v19 = vld [vmem:[#allocation7 + $0x38] sm:$0xff] }
  0x48   :  { %453 = vmatprep.subr.bf16.mxu0 %v452_v36  ;;  %477 = vmatprep.subr.bf16.mxu1 %v476_v49  ;;  %v480_v60 = vpack.c.bf16 %v197_v59, %v193_v55  ;;  %v201_v1 = vld [vmem:[#allocation7 + $0x108] sm:$0xff]  ;;  %v200_v10 = vld [vmem:[#allocation7 + $0x100] sm:$0xff]  ;;  %v500_v27 = vpack.c.bf16 %v175_v19, %v171_v18  ;;  %v170_v28 = vld [vmem:[#allocation7 + $0x10] sm:$0xff] }
  0x49   :  { %v205_v2 = vld [vmem:[#allocation7 + $0x128] sm:$0xff]  ;;  %v204_v11 = vld [vmem:[#allocation7 + $0x120] sm:$0xff]  ;;  %v174_v29 = vld [vmem:[#allocation7 + $0x30] sm:$0xff] }
  0x4a   :  { %v72_v5 = vld [vmem:[#allocation5 + $0x68] sm:$0xff]  ;;  %v484_v9 = vpack.c.bf16 %v205_v2, %v201_v1  ;;  %v486_v20 = vpack.c.bf16 %v204_v11, %v200_v10  ;;  %v208_v22 = vld [vmem:[#allocation7 + $0x140] sm:$0xff]  ;;  %v179_v30 = vld [vmem:[#allocation7 + $0x58] sm:$0xff]  ;;  %v502_v37 = vpack.c.bf16 %v174_v29, %v170_v28 }
  0x4b   :  { %455 = vmatpush3.bf16.msra.mxu0 %v454_v48  ;;  %479 = vmatpush1.bf16.msra.mxu1 %v478_v58  ;;  %v462_v12 = vpack.c.bf16 %v72_v5, %v71_v4  ;;  %v209_v13 = vld [vmem:[#allocation7 + $0x148] sm:$0xff]  ;;  %v212_v23 = vld [vmem:[#allocation7 + $0x160] sm:$0xff]  ;;  %v183_v31 = vld [vmem:[#allocation7 + $0x78] sm:$0xff] }
  0x4c   :  { %457 = vmatprep.subr.bf16.mxu0 %v456_v52  ;;  %481 = vmatprep.subr.bf16.mxu1 %v480_v60  ;;  %v213_v14 = vld [vmem:[#allocation7 + $0x168] sm:$0xff]  ;;  %v490_v32 = vpack.c.bf16 %v212_v23, %v208_v22  ;;  %v216_v35 = vld [vmem:[#allocation7 + $0x180] sm:$0xff]  ;;  %v504_v40 = vpack.c.bf16 %v183_v31, %v179_v30  ;;  %v178_v41 = vld [vmem:[#allocation7 + $0x50] sm:$0xff] }
  0x4d   :  { %v488_v21 = vpack.c.bf16 %v213_v14, %v209_v13  ;;  %v217_v25 = vld [vmem:[#allocation7 + $0x188] sm:$0xff]  ;;  %v220_v36 = vld [vmem:[#allocation7 + $0x1a0] sm:$0xff]  ;;  %v182_v42 = vld [vmem:[#allocation7 + $0x70] sm:$0xff] }
  0x4e   :  { %v221_v26 = vld [vmem:[#allocation7 + $0x1a8] sm:$0xff]  ;;  %v187_v43 = vld [vmem:[#allocation7 + $0x98] sm:$0xff]  ;;  %v494_v45 = vpack.c.bf16 %v220_v36, %v216_v35  ;;  %v224_v47 = vld [vmem:[#allocation7 + $0x1c0] sm:$0xff]  ;;  %v506_v49 = vpack.c.bf16 %v182_v42, %v178_v41 }
  0x4f   :  { %459 = vmatpush3.bf16.msra.mxu0 %v458_v63  ;;  %483 = vmatpush1.bf16.msra.mxu1 %v482_v8  ;;  %v492_v34 = vpack.c.bf16 %v221_v26, %v217_v25  ;;  %v225_v38 = vld [vmem:[#allocation7 + $0x1c8] sm:$0xff]  ;;  %v191_v44 = vld [vmem:[#allocation7 + $0xb8] sm:$0xff]  ;;  %v228_v48 = vld [vmem:[#allocation7 + $0x1e0] sm:$0xff] }
  0x50   :  { %461 = vmatprep.subr.bf16.mxu0 %v460_v3  ;;  %485 = vmatprep.subr.bf16.mxu1 %v484_v9  ;;  %v229_v39 = vld [vmem:[#allocation7 + $0x1e8] sm:$0xff]  ;;  %v508_v50 = vpack.c.bf16 %v191_v44, %v187_v43  ;;  %v186_v51 = vld [vmem:[#allocation7 + $0x90] sm:$0xff]  ;;  %v195_v53 = vld [vmem:[#allocation7 + $0xd8] sm:$0xff]  ;;  %v498_v55 = vpack.c.bf16 %v228_v48, %v224_v47 }
  0x51   :  { %v496_v46 = vpack.c.bf16 %v229_v39, %v225_v38  ;;  %v190_v52 = vld [vmem:[#allocation7 + $0xb0] sm:$0xff]  ;;  %v199_v54 = vld [vmem:[#allocation7 + $0xf8] sm:$0xff] }
  0x52   :  { %v510_v56 = vpack.c.bf16 %v190_v52, %v186_v51  ;;  %v512_v57 = vpack.c.bf16 %v199_v54, %v195_v53  ;;  %v194_v58 = vld [vmem:[#allocation7 + $0xd0] sm:$0xff]  ;;  %v203_v60 = vld [vmem:[#allocation7 + $0x118] sm:$0xff] }
  0x53   :  { %463 = vmatpush3.bf16.msra.mxu0 %v462_v12  ;;  %487 = vmatpush1.bf16.msra.mxu1 %v486_v20  ;;  %v198_v59 = vld [vmem:[#allocation7 + $0xf0] sm:$0xff]  ;;  %v207_v61 = vld [vmem:[#allocation7 + $0x138] sm:$0xff] }
  0x54   :  { %465 = vmatprep.subr.bf16.mxu0 %v464_v15  ;;  %489 = vmatprep.subr.bf16.mxu1 %v488_v21  ;;  %v516_v62 = vpack.c.bf16 %v207_v61, %v203_v60  ;;  %v202_v63 = vld [vmem:[#allocation7 + $0x110] sm:$0xff]  ;;  %v211_v2 = vld [vmem:[#allocation7 + $0x158] sm:$0xff] }
  0x55   :  { %v206_v1 = vld [vmem:[#allocation7 + $0x130] sm:$0xff]  ;;  %v215_v3 = vld [vmem:[#allocation7 + $0x178] sm:$0xff] }
  0x56   :  { %v518_v4 = vpack.c.bf16 %v206_v1, %v202_v63  ;;  %v520_v5 = vpack.c.bf16 %v215_v3, %v211_v2  ;;  %v210_v6 = vld [vmem:[#allocation7 + $0x150] sm:$0xff]  ;;  %v219_v8 = vld [vmem:[#allocation7 + $0x198] sm:$0xff] }
  0x57   :  { %467 = vmatpush3.bf16.msra.mxu0 %v466_v24  ;;  %491 = vmatpush1.bf16.msra.mxu1 %v490_v32  ;;  %v214_v7 = vld [vmem:[#allocation7 + $0x170] sm:$0xff]  ;;  %v223_v9 = vld [vmem:[#allocation7 + $0x1b8] sm:$0xff] }
  0x58   :  { %501 = vmatprep.subr.bf16.mxu0 %v500_v27  ;;  %493 = vmatprep.subr.bf16.mxu1 %v492_v34  ;;  %v522_v10 = vpack.c.bf16 %v214_v7, %v210_v6  ;;  %v524_v11 = vpack.c.bf16 %v223_v9, %v219_v8  ;;  %v218_v12 = vld [vmem:[#allocation7 + $0x190] sm:$0xff]  ;;  %v227_v14 = vld [vmem:[#allocation7 + $0x1d8] sm:$0xff] }
  0x59   :  { %v222_v13 = vld [vmem:[#allocation7 + $0x1b0] sm:$0xff]  ;;  %v231_v15 = vld [vmem:[#allocation7 + $0x1f8] sm:$0xff] }
  0x5a   :  { %163 = vmatmul.mubr.f32.vlgmr.msra.gmra.mrb[0].mxu0 %v706_v33  ;;  %v526_v16 = vpack.c.bf16 %v222_v13, %v218_v12  ;;  %v528_v17 = vpack.c.bf16 %v231_v15, %v227_v14  ;;  %v226_v18 = vld [vmem:[#allocation7 + $0x1d0] sm:$0xff]  ;;  %v400_v35 = vld [vmem:[%s731_s2] ss:$0 sm:$0xff] }
  0x5b   :  { %503 = vmatpush1.bf16.msra.mxu0 %v502_v37  ;;  %367 = vmatprep.mubr.f32.mxu0 %v642_v0  ;;  %v514_v0 = vpack.c.bf16 %v198_v59, %v194_v58  ;;  %v230_v19 = vld [vmem:[#allocation7 + $0x1f0] sm:$0xff] }
  0x5c   :  { %505 = vmatprep.subr.bf16.mxu0 %v504_v40  ;;  %495 = vmatpush1.bf16.msra.mxu1 %v494_v45  ;;  %v530_v20 = vpack.c.bf16 %v230_v19, %v226_v18 }
  0x5d   :  { %497 = vmatprep.subr.bf16.mxu1 %v496_v46 }
  0x5f   :  { %507 = vmatpush1.bf16.msra.mxu0 %v506_v49 }
  0x60   :  { %509 = vmatprep.subr.bf16.mxu0 %v508_v50  ;;  %499 = vmatpush1.bf16.msra.mxu1 %v498_v55 }
  0x63   :  { %511 = vmatpush1.bf16.msra.mxu0 %v510_v56  ;;  %297 = vmatmul.mubr.f32.vlgmr.msra.gmra.mrb[0].mxu1 %v706_v33 }
  0x64   :  { %513 = vmatprep.subr.bf16.mxu0 %v512_v57 }
  0x67   :  { %515 = vmatpush1.bf16.msra.mxu0 %v514_v0 }
  0x68   :  { %517 = vmatprep.subr.bf16.mxu0 %v516_v62 }
  0x6b   :  { %519 = vmatpush1.bf16.msra.mxu0 %v518_v4 }
  0x6c   :  { %521 = vmatprep.subr.bf16.mxu0 %v520_v5 }
  0x6f   :  { %523 = vmatpush1.bf16.msra.mxu0 %v522_v10 }
  0x70   :  { %525 = vmatprep.subr.bf16.mxu0 %v524_v11 }
  0x73   :  { %527 = vmatpush1.bf16.msra.mxu0 %v526_v16 }
  0x74   :  { %529 = vmatprep.subr.bf16.mxu0 %v528_v17 }
  0x77   :  { %531 = vmatpush1.bf16.msra.mxu0 %v530_v20 }
  0x7a   :  { %368 = vmatmul.mubr.f32.vlgmr.msra.gmra.mrb[2].mxu0 %v706_v33 }
 0x12d   :  { %v433_v21 = vpop.f32.mrb[0].mxu0 }
 0x12e   :  { %v434_v22 = vpop.f32.mrb[1].mxu0 }
 0x12f   :  { %v435_v23 = vadd.f32 %v434_v22, %v433_v21 }
 0x131   :  { %v165_v33 = vadd.f32 %v435_v23, %v400_v35 }
 0x136   :  { %v298_v24 = vpop.f32.mrb[0].mxu1 }
 0x137   :  { %v374_v25 = vmul.f32 %v298_v24, %v298_v24  ;;  %v300_v26 = vpop.f32.mrb[1].mxu1 }
 0x138   :  { %v375_v27 = vmul.f32 %v300_v26, %v300_v26 }
 0x13a   :  { %v378_v28 = vadd.f32 %v375_v27, %v374_v25 }
 0x14d   :  { %v369_v29 = vpop.f32.mrb[2].mxu0 }
 0x14e   :  { %v376_v30 = vmul.f32 %v369_v29, %v369_v29  ;;  %v371_v31 = vpop.f32.mrb[3].mxu0 }
 0x14f   :  { %v377_v32 = vmul.f32 %v371_v31, %v371_v31 }
 0x150   :  { %v379_v34 = vadd.f32 %v378_v28, %v376_v30 }
 0x152   :  { %v380_v36 = vadd.f32 %v379_v34, %v377_v32 }
 0x154   :  { %v381_v37 = vmul.f32 0.5, %v380_v36 }
 0x156   :  { %v382_v38 = vadd.f32 %v381_v37, %v165_v33 }
 0x158   :  { %383 = vst [vmem:[#allocation8] sm:$0xff] %v382_v38 }
 0x159   :  { %618 = shalt.err (!%p615_p0)
}
 0x15a   :  { %s619_s7 = scalar_lea.hbm %s733_s4, 128 }
 0x15b   :  { %p620_p1 = scmp.ne.s32.totalorder %s733_s4, %s619_s7  ;;  %p623_p2 = scmp.lt.u32.totalorder %s619_s7, %s733_s4 }
 0x15d   :  { %p625_p3 = pnand %p623_p2, %p620_p1 }
 0x15f   :  { %628 = shalt.err (!%p625_p3)
}
 0x160   :  { %393 = dma.vmem_to_hbm [thread:$0]  %s391_s29, 128, %s733_s4, [#allocation4]  }
 0x161   :  { %633 = dma.done.wait [#allocation4], 128  }
 0x162   :  { %634 = vsyncadd [#allocation4], 4294967168 }
 0x163   :  { %397 = vsyncpa [#allocation3], 1 }
 0x164   :  { %398 = vsyncpa [#allocation6], 1 }
 0x165   :  { %399 = vsyncpa [#allocation4], 1 }

</bundles_post_ra>
